<compile_context>
chip_gen: v6e
topology: v6e:2x2x1
jax: 0.10.0
libtpu: 0.0.40
codegen_flags: <defaults>
</compile_context>

<pallas_src>
import functools
import math

import jax
import jax.numpy as jnp
from jax import lax
from jax.experimental import pallas as pl
from jax.experimental.pallas import tpu as pltpu

_EPS = 1e-12  # torch.nn.functional.normalize default eps


def _prompt_pool_kernel(x_ref, wnum_ref, wden_ref, p_ref, o_ref, *,
                        n_layers, pool_f):
    """All prompt layers in one kernel invocation (single grid step).

    x:     [B, Dk]
    w_num: [NL*F, Dk]  = A_l * normalize(K_l, dim=1), stacked over layers
    w_den: [NL*F, Dk]  = A_l * A_l,                   stacked over layers
    p:     [NL*F, L*De]
    o:     [NL*B, L*De]  lane-dense slab; reshaped to [NL, B, L, De] outside.
    """
    x = x_ref[...]                       # [B, Dk]
    w_num = wnum_ref[...]                # [NL*F, Dk]
    w_den = wden_ref[...]                # [NL*F, Dk]
    p2d = p_ref[...]                     # [NL*F, L*De]

    # Two layer-batched contractions over Dk; single MXU pass each, they
    # pipeline back-to-back (no concat / quadrant-slice relayout).
    dims = (((1,), (1,)), ((), ()))
    num = lax.dot_general(x, w_num, dims,
                          preferred_element_type=jnp.float32)        # [B, NL*F]
    den_sq = lax.dot_general(x * x, w_den, dims,
                             preferred_element_type=jnp.float32)     # [B, NL*F]

    # aq_k = num / max(||x_b ⊙ A_k||, eps) == num * rsqrt(max(den_sq, eps^2))
    aq = num * lax.rsqrt(jnp.maximum(den_sq, _EPS * _EPS))           # [B, NL*F]

    # Per-layer prompt mixing, unrolled over the (tiny, static) layer count;
    # emit the whole output slab with one store.
    outs = []
    for l in range(n_layers):
        aq_l = aq[:, l * pool_f:(l + 1) * pool_f]                    # [B, F]
        p_l = p2d[l * pool_f:(l + 1) * pool_f, :]                    # [F, L*De]
        outs.append(jnp.dot(aq_l, p_l, preferred_element_type=jnp.float32))
    o_ref[...] = jnp.concatenate(outs, axis=0) if n_layers > 1 else outs[0]


def prompt_pool_prepare(K_all, A_all, p_all):
    """Weight-only preprocessing — frozen at eval time, compute once and reuse.

    K_all, A_all: [NL, F, key_d]; p_all: [NL, F, L, emb_d]
    -> w_num [NL*F, key_d], w_den [NL*F, key_d], p2d [NL*F, L*emb_d]
    """
    NL, F, Dk = K_all.shape
    L, De = p_all.shape[2], p_all.shape[3]
    # n_K = F.normalize(K, dim=1) == K * rsqrt(max(sum(K*K), eps^2))
    inv_knorm = lax.rsqrt(
        jnp.maximum(jnp.sum(K_all * K_all, axis=-1, keepdims=True), _EPS * _EPS))
    w_num = (A_all * K_all * inv_knorm).reshape(NL * F, Dk)
    w_den = (A_all * A_all).reshape(NL * F, Dk)
    p2d = p_all.reshape(NL * F, L * De)
    return w_num, w_den, p2d


def prompt_pool_apply(x, w_num, w_den, p2d, *, n_layers):
    """Run the fused kernel. Returns [NL, B, L*De]."""
    B, Dk = x.shape
    NLF, LDe = p2d.shape
    F = NLF // n_layers

    kernel = functools.partial(_prompt_pool_kernel,
                               n_layers=n_layers, pool_f=F)

    flops = 2 * (2 * B * NLF * Dk) + 2 * B * NLF * LDe
    bytes_accessed = 4 * (B * Dk + 2 * NLF * Dk + NLF * LDe + n_layers * B * LDe)

    out = pl.pallas_call(
        kernel,
        out_shape=jax.ShapeDtypeStruct((n_layers * B, LDe), jnp.float32),
        grid=(1,),  # single step: all operands VMEM-resident, no pipeline overhead
        in_specs=[
            pl.BlockSpec((B, Dk), lambda i: (0, 0)),          # x
            pl.BlockSpec((NLF, Dk), lambda i: (0, 0)),        # A*n_K (all layers)
            pl.BlockSpec((NLF, Dk), lambda i: (0, 0)),        # A*A   (all layers)
            pl.BlockSpec((NLF, LDe), lambda i: (0, 0)),       # p     (all layers)
        ],
        out_specs=pl.BlockSpec((n_layers * B, LDe), lambda i: (0, 0)),
        compiler_params=pltpu.CompilerParams(
            dimension_semantics=("arbitrary",)),
        cost_estimate=pl.CostEstimate(
            flops=flops, transcendentals=B * NLF, bytes_accessed=bytes_accessed),
    )(x, w_num, w_den, p2d)
    return out.reshape(n_layers, B, LDe)


def prompt_pool_forward_layers(x, K_all, A_all, p_all):
    """All prompt layers, one fused kernel invocation.

    x: [B, key_d]; K_all, A_all: [NL, F, key_d]; p_all: [NL, F, L, emb_d]
    -> [NL, B, L, emb_d]
    """
    NL, F, L, De = p_all.shape
    B = x.shape[0]
    # NOTE: in a real serving loop call prompt_pool_prepare once (frozen pool
    # params at eval time) and pass the prepared weights to prompt_pool_apply.
    w_num, w_den, p2d = prompt_pool_prepare(K_all, A_all, p_all)
    out = prompt_pool_apply(x, w_num, w_den, p2d, n_layers=NL)
    return out.reshape(NL, B, L, De)


def prompt_pool_forward(x, K, A, p, *, position="prompt"):
    """Single prompt layer (PromptPool.forward(x, l) semantics after slicing).

    x:[B,key_d], K,A:[F,key_d], p:[F,L,emb_d] -> [B,L,emb_d] (or [Ek, Ev]).
    """
    P_ = prompt_pool_forward_layers(x, K[None], A[None], p[None])[0]  # [B,L,De]
    if position == "attention":
        i = p.shape[1] // 2
        return [P_[:, :i, :], P_[:, i:, :]]
    # torch.hstack((P_[:, :i], P_[:, i:])) on 3-D tensors concatenates along
    # dim=1, which is the identity -> return P_ directly (no extra copy).
    return P_


def _orthonormal_rows(key, shape):
    # TODO(synk): PromptPool.gram_schmidt uses a data-dependent randn/redo loop;
    # it is parameter INIT only (not forward compute), so we use a deterministic
    # QR-based orthonormal-row init here instead of porting it to Pallas.
    n = shape[0]
    flat = int(math.prod(shape[1:]))
    m = jax.random.uniform(key, (n, flat), dtype=jnp.float32)
    q, _ = jnp.linalg.qr(m.T)          # [flat, n] with orthonormal columns
    return q.T[:n].reshape(shape).astype(jnp.float32)


def _reference(x, K, A, p):
    # Pure-JAX transcription of the PyTorch forward (eval branch).
    a_q = x[:, None, :] * A[None, :, :]                                   # bkd
    nK = K / jnp.maximum(jnp.linalg.norm(K, axis=1, keepdims=True), _EPS)
    q = a_q / jnp.maximum(jnp.linalg.norm(a_q, axis=2, keepdims=True), _EPS)
    aq_k = jnp.einsum("bkd,kd->bk", q, nK)
    P_ = jnp.einsum("bk,kld->bld", aq_k, p)
    i = p.shape[1] // 2
    return jnp.concatenate([P_[:, :i], P_[:, i:]], axis=1)   # == P_ (hstack id)


if __name__ == "__main__":
    # cfg: HIDDEN_SIZE=32, KEY_HIDDEN_SIZE=16, NUM_TASKS=4, LAYERS=2,
    #      POOL_SIZE=8, LENGTH=8, POSITION='prompt'
    emb_d, key_d, n_tasks, n_layers, pool, length = 32, 16, 4, 2, 8, 8
    position = "prompt"
    task_count = n_tasks - 1            # eval path: use K[0:f], f = (tc+1)*pt
    B = 2

    key = jax.random.PRNGKey(0)
    keys = jax.random.split(key, 3 * n_layers + 1)

    # Parameters per layer: p:[pool, L, emb_d], k:[pool, key_d], a:[pool, key_d]
    params = []
    for e in range(n_layers):
        p_e = _orthonormal_rows(keys[3 * e + 0], (pool, length, emb_d))
        k_e = _orthonormal_rows(keys[3 * e + 1], (pool, key_d))
        a_e = _orthonormal_rows(keys[3 * e + 2], (pool, key_d))
        params.append((k_e, a_e, p_e))

    x_querry = jax.random.normal(keys[-1], (B, key_d), dtype=jnp.float32)

    pt = pool // n_tasks
    f = (task_count + 1) * pt            # eval-mode active slice 0:f (== pool here)

    # Glue slicing (eval branch of PromptPool.forward) + stack all layers so a
    # full forward over every prompt layer is ONE pallas_call.
    K_all = jnp.stack([k[:f] for (k, a, p) in params])        # [NL, f, key_d]
    A_all = jnp.stack([a[:f] for (k, a, p) in params])        # [NL, f, key_d]
    p_all = jnp.stack([p[:f] for (k, a, p) in params])        # [NL, f, L, emb_d]

    P_all = prompt_pool_forward_layers(x_querry, K_all, A_all, p_all)
    P_all = jax.block_until_ready(P_all)                      # [NL, B, L, emb_d]

    # Per-layer wrapper (PromptPool.forward(x, l)) + correctness vs reference.
    ok = True
    for e, (K_e, A_e, p_e) in enumerate(params):
        out_e = prompt_pool_forward(x_querry, K_e[:f], A_e[:f], p_e[:f],
                                    position=position)
        out_e = jax.block_until_ready(out_e)
        ref_e = _reference(x_querry, K_e[:f], A_e[:f], p_e[:f])
        assert out_e.shape == (B, length, emb_d)
        ok &= bool(jnp.allclose(out_e, ref_e, atol=1e-5, rtol=1e-5))
        ok &= bool(jnp.allclose(P_all[e], ref_e, atol=1e-5, rtol=1e-5))
    assert ok, "mismatch vs JAX reference"

    print("KERNEL_OK")
</pallas_src>

<mosaic_0001>
module attributes {stable_mosaic.version = 11 : i64} {
  func.func @_prompt_pool_kernel(%arg0: i32, %arg1: memref<2x16xf32, #tpu.memory_space<vmem>>, %arg2: memref<16x16xf32, #tpu.memory_space<vmem>>, %arg3: memref<16x16xf32, #tpu.memory_space<vmem>>, %arg4: memref<16x256xf32, #tpu.memory_space<vmem>>, %arg5: memref<4x256xf32, #tpu.memory_space<vmem>>) attributes {dimension_semantics = [#tpu.dimension_semantics<arbitrary>], iteration_bounds = array<i64: 1>, scalar_prefetch = 0 : i64, scratch_operands = 0 : i64, tpu.core_type = #tpu.core_type<tc>, window_params = [{pipeline_mode = #tpu.pipeline_mode<synchronous>, transform_indices = @transform_0, window_bounds = array<i64: 2, 16>}, {pipeline_mode = #tpu.pipeline_mode<synchronous>, transform_indices = @transform_1, window_bounds = array<i64: 16, 16>}, {pipeline_mode = #tpu.pipeline_mode<synchronous>, transform_indices = @transform_2, window_bounds = array<i64: 16, 16>}, {pipeline_mode = #tpu.pipeline_mode<synchronous>, transform_indices = @transform_3, window_bounds = array<i64: 16, 256>}, {pipeline_mode = #tpu.pipeline_mode<synchronous>, transform_indices = @transform_4, window_bounds = array<i64: 4, 256>}]} {
    %c0 = arith.constant 0 : index
    %c0_0 = arith.constant 0 : index
    %0 = vector.load %arg1[%c0, %c0_0] : memref<2x16xf32, #tpu.memory_space<vmem>>, vector<2x16xf32>
    %c0_1 = arith.constant 0 : index
    %c0_2 = arith.constant 0 : index
    %1 = vector.load %arg2[%c0_1, %c0_2] : memref<16x16xf32, #tpu.memory_space<vmem>>, vector<16x16xf32>
    %c0_3 = arith.constant 0 : index
    %c0_4 = arith.constant 0 : index
    %2 = vector.load %arg3[%c0_3, %c0_4] : memref<16x16xf32, #tpu.memory_space<vmem>>, vector<16x16xf32>
    %c0_5 = arith.constant 0 : index
    %c0_6 = arith.constant 0 : index
    %3 = vector.load %arg4[%c0_5, %c0_6] : memref<16x256xf32, #tpu.memory_space<vmem>>, vector<16x256xf32>
    %cst = arith.constant dense<0.000000e+00> : vector<2x16xf32>
    %4 = tpu.matmul %0, %1, %cst {dimension_numbers = #tpu.dot_dimension_numbers<[1], [1], [0], [0], [0, 0, 1, 0], [], []>} : vector<2x16xf32>, vector<16x16xf32>, vector<2x16xf32> -> vector<2x16xf32>
    %5 = arith.mulf %0, %0 : vector<2x16xf32>
    %cst_7 = arith.constant dense<0.000000e+00> : vector<2x16xf32>
    %6 = tpu.matmul %5, %2, %cst_7 {dimension_numbers = #tpu.dot_dimension_numbers<[1], [1], [0], [0], [0, 0, 1, 0], [], []>} : vector<2x16xf32>, vector<16x16xf32>, vector<2x16xf32> -> vector<2x16xf32>
    %cst_8 = arith.constant 1.000000e-24 : f32
    %7 = vector.broadcast %cst_8 : f32 to vector<2x16xf32>
    %8 = arith.maximumf %6, %7 : vector<2x16xf32>
    %9 = math.rsqrt %8 : vector<2x16xf32>
    %10 = arith.mulf %4, %9 : vector<2x16xf32>
    %11 = vector.extract_strided_slice %10 {offsets = [0, 0], sizes = [2, 8], strides = [1, 1]} : vector<2x16xf32> to vector<2x8xf32>
    %12 = vector.extract_strided_slice %3 {offsets = [0, 0], sizes = [8, 256], strides = [1, 1]} : vector<16x256xf32> to vector<8x256xf32>
    %cst_9 = arith.constant dense<0.000000e+00> : vector<2x256xf32>
    %13 = tpu.matmul %11, %12, %cst_9 {dimension_numbers = #tpu.dot_dimension_numbers<[1], [0], [0], [1], [0, 0, 1, 1], [], []>} : vector<2x8xf32>, vector<8x256xf32>, vector<2x256xf32> -> vector<2x256xf32>
    %14 = vector.extract_strided_slice %10 {offsets = [0, 8], sizes = [2, 8], strides = [1, 1]} : vector<2x16xf32> to vector<2x8xf32>
    %15 = vector.extract_strided_slice %3 {offsets = [8, 0], sizes = [8, 256], strides = [1, 1]} : vector<16x256xf32> to vector<8x256xf32>
    %cst_10 = arith.constant dense<0.000000e+00> : vector<2x256xf32>
    %16 = tpu.matmul %14, %15, %cst_10 {dimension_numbers = #tpu.dot_dimension_numbers<[1], [0], [0], [1], [0, 0, 1, 1], [], []>} : vector<2x8xf32>, vector<8x256xf32>, vector<2x256xf32> -> vector<2x256xf32>
    %17 = tpu.concatenate %13, %16 in 0 : vector<2x256xf32>, vector<2x256xf32> -> vector<4x256xf32>
    %c0_11 = arith.constant 0 : index
    %c0_12 = arith.constant 0 : index
    %18 = vector.load %arg5[%c0_11, %c0_12] : memref<4x256xf32, #tpu.memory_space<vmem>>, vector<4x256xf32>
    tpu.vector_store %arg5[%c0_11, %c0_12], %17 {strides = array<i32>} : memref<4x256xf32, #tpu.memory_space<vmem>>, vector<4x256xf32>,
    return
  }
  func.func @transform_0(%arg0: i32) -> (i32, i32) {
    %c0_i32 = arith.constant 0 : i32
    %c0_i32_0 = arith.constant 0 : i32
    %c0_i32_1 = arith.constant 0 : i32
    return %c0_i32, %c0_i32_0 : i32, i32
  }
  func.func @transform_1(%arg0: i32) -> (i32, i32) {
    %c0_i32 = arith.constant 0 : i32
    %c0_i32_0 = arith.constant 0 : i32
    %c0_i32_1 = arith.constant 0 : i32
    return %c0_i32, %c0_i32_0 : i32, i32
  }
  func.func @transform_2(%arg0: i32) -> (i32, i32) {
    %c0_i32 = arith.constant 0 : i32
    %c0_i32_0 = arith.constant 0 : i32
    %c0_i32_1 = arith.constant 0 : i32
    return %c0_i32, %c0_i32_0 : i32, i32
  }
  func.func @transform_3(%arg0: i32) -> (i32, i32) {
    %c0_i32 = arith.constant 0 : i32
    %c0_i32_0 = arith.constant 0 : i32
    %c0_i32_1 = arith.constant 0 : i32
    return %c0_i32, %c0_i32_0 : i32, i32
  }
  func.func @transform_4(%arg0: i32) -> (i32, i32) {
    %c0_i32 = arith.constant 0 : i32
    %c0_i32_0 = arith.constant 0 : i32
    %c0_i32_1 = arith.constant 0 : i32
    return %c0_i32, %c0_i32_0 : i32, i32
  }
}

</mosaic_0001>

<bundles_post_ra>
// kernel: tpu_custom_call.1
= control target key start
LH: loop header
LB: loop body
LE: loop exit
PB: predicated region body
PF: predicated region fallthrough
CT: control target
= control target key end

     0   :  { %9 = vsyncpa [#allocation3], 0  ;;  %s626_s0 = inlined_call_operand.hbm [shape: f32[2,16], index: 0, kind: input, shape index: {}]   ;;  %s627_s1 = inlined_call_operand.hbm [shape: f32[16,16], index: 1, kind: input, shape index: {}]   ;;  %s628_s2 = inlined_call_operand.hbm [shape: f32[16,16], index: 2, kind: input, shape index: {}]   ;;  %s629_s3 = inlined_call_operand.hbm [shape: f32[16,256], index: 3, kind: input, shape index: {}]   ;;  %s630_s4 = inlined_call_operand.hbm [shape: f32[4,256], index: 4, kind: output, shape index: {}]  }
   0x1   :  { %10 = vsyncpa [#allocation6], 0 }
   0x2   :  { %11 = vsyncpa [#allocation9], 0 }
   0x3   :  { %12 = vsyncpa [#allocation4], 0  ;;  %s574_s15 = smov [#allocation5]  }
   0x4   :  { %s28_s16 = sshll.u32 %s574_s15, 4  ;;  %s29_s16 = int_to_ptr.vmem [resolvable:$true] %s28_s16 }
   0x5   :  { %s474_s17 = scalar_lea.vmem %s29_s16, 256  ;;  %p479_p1 = scmp.lt.s32.totalorder %s29_s16, %s29_s16 }
   0x6   :  { %p475_p0 = scmp.ne.s32.totalorder %s29_s16, %s474_s17  ;;  %p480_p2 = scmp.lt.s32.totalorder %s474_s17, %s474_s17 }
   0x8   :  { %p481_p3 = por %p480_p2, %p479_p1 }
   0xa   :  { %p482_p4 = pnand %p481_p3, %p475_p0 }
   0xc   :  { %485 = shalt.err (!%p482_p4)
}
   0xd   :  { %s575_s18 = smov 128   ;;  %s576_s19 = smov 8  }
   0xe   :  { %34 = dma.hbm_to_vmem [thread:$0]  %s627_s1, 256, %s29_s16, [#allocation6], %s575_s18, %s575_s18, %s576_s19  }
   0xf   :  { %s577_s22 = smov [#allocation2]   ;;  %s578_s24 = smov [#allocation7]  }
  0x10   :  { %s19_s23 = sshll.u32 %s577_s22, 4  ;;  %s40_s25 = sshll.u32 %s578_s24, 4  ;;  %s20_s23 = int_to_ptr.vmem [resolvable:$true] %s19_s23  ;;  %s41_s25 = int_to_ptr.vmem [resolvable:$true] %s40_s25 }
  0x11   :  { %s494_s26 = scalar_lea.vmem %s20_s23, 32  ;;  %p499_p6 = scmp.lt.s32.totalorder %s20_s23, %s20_s23 }
  0x12   :  { %p495_p5 = scmp.ne.s32.totalorder %s20_s23, %s494_s26  ;;  %p500_p7 = scmp.lt.s32.totalorder %s494_s26, %s494_s26 }
  0x14   :  { %p501_p8 = por %p500_p7, %p499_p6 }
  0x16   :  { %p502_p9 = pnand %p501_p8, %p495_p5 }
  0x18   :  { %505 = shalt.err (!%p502_p9)
}
  0x19   :  { %22 = dma.hbm_to_vmem [thread:$0]  %s626_s0, 32, %s20_s23, [#allocation3]  }
  0x1a   :  { %s514_s29 = scalar_lea.vmem %s41_s25, 256  ;;  %p519_p11 = scmp.lt.s32.totalorder %s41_s25, %s41_s25 }
  0x1b   :  { %p515_p10 = scmp.ne.s32.totalorder %s41_s25, %s514_s29  ;;  %p520_p12 = scmp.lt.s32.totalorder %s514_s29, %s514_s29 }
  0x1d   :  { %p521_p13 = por %p520_p12, %p519_p11 }
  0x1f   :  { %p522_p0 = pnand %p521_p13, %p515_p10 }
  0x21   :  { %525 = shalt.err (!%p522_p0)
}
  0x22   :  { %46 = dma.hbm_to_vmem [thread:$0]  %s628_s2, 256, %s41_s25, [#allocation6], %s575_s18, %s575_s18, %s576_s19  }
  0x23   :  { %s579_s5 = smov [#allocation8]  }
  0x24   :  { %s52_s6 = sshll.u32 %s579_s5, 4  ;;  %s53_s6 = int_to_ptr.vmem [resolvable:$true] %s52_s6 }
  0x25   :  { %s534_s7 = scalar_lea.vmem %s53_s6, 512  ;;  %p539_p2 = scmp.lt.s32.totalorder %s53_s6, %s53_s6 }
  0x26   :  { %p535_p1 = scmp.ne.s32.totalorder %s53_s6, %s534_s7  ;;  %p540_p3 = scmp.lt.s32.totalorder %s534_s7, %s534_s7 }
  0x28   :  { %p541_p4 = por %p540_p3, %p539_p2 }
  0x2a   :  { %p542_p5 = pnand %p541_p4, %p535_p1 }
  0x2c   :  { %545 = shalt.err (!%p542_p5)
}
  0x2d   :  { %s580_s0 = smov 256   ;;  %s581_s8 = smov 16  }
  0x2e   :  { %58 = dma.hbm_to_vmem [thread:$0]  %s629_s3, 512, %s53_s6, [#allocation9], %s580_s0, %s580_s0, %s581_s8  }
  0x2f   :  { %566 = dma.done.wait [#allocation3], 32  }
  0x30   :  { %567 = vsyncadd [#allocation3], 4294967264 }
  0x31   :  { %568 = dma.done.wait [#allocation6], 512  }
  0x32   :  { %569 = vsyncadd [#allocation6], 4294966784 }
  0x33   :  { %570 = dma.done.wait [#allocation9], 512  }
  0x34   :  { %571 = vsyncadd [#allocation9], 4294966784  ;;  %v582_v0 = vmov 0.0   ;;  %vm583_vm0 = vmmov 0   ;;  %vm80_vm1 = vcmask 130048   ;;  %v75_v1 = vld [vmem:[#allocation7 + $0x8] sm:$0xff] }
  0x35   :  { %445 = vmatprep.subr.mxu1 %v582_v0  ;;  %449 = vmatprep.mubr.msk.f32.mxu1 %vm583_vm0, %v582_v0  ;;  %v71_v2 = vld [vmem:[#allocation2] sm:$0x3]  ;;  %v73_v3 = vld [vmem:[#allocation5 + $0x8] sm:$0xff]  ;;  %v74_v4 = vld [vmem:[#allocation7] sm:$0xff]  ;;  %vm243_vm2 = vcmask 64512   ;;  %s584_s2 = smov 120  }
  0x36   :  { %438 = vmatprep.subr.mxu0 %v582_v0  ;;  %442 = vmatprep.mubr.msk.f32.mxu0 %vm583_vm0, %v582_v0  ;;  %v72_v5 = vld [vmem:[#allocation5] sm:$0xff]  ;;  %v160_v6 = vmul.f32 %v71_v2, %v71_v2  ;;  %v77_v7 = vld [vmem:[#allocation8 + $0x8] sm:$0xff]  ;;  %v79_v9 = vld [vmem:[#allocation8 + $0x18] sm:$0xff]  ;;  %vm399_vm3 = vcmask 1041408   ;;  %s585_s3 = smov [#allocation10]  }
  0x37   :  { %446 = vmatpush3.xpose.msk.msra.mxu1 %vm80_vm1, %v75_v1  ;;  %439 = vmatpush3.xpose.msk.msra.mxu0 %vm80_vm1, %v73_v3  ;;  %v76_v8 = vld [vmem:[#allocation8] sm:$0xff]  ;;  %v78_v10 = vld [vmem:[#allocation8 + $0x10] sm:$0xff]  ;;  %s413_s11 = sshll.u32 %s585_s3, 4  ;;  %s414_s11 = int_to_ptr.vmem [resolvable:$true] %s413_s11 }
  0x38   :  { %447 = vmatprep.subr.mxu1 %v582_v0  ;;  %440 = vmatprep.subr.mxu0 %v582_v0  ;;  %s546_s12 = scalar_lea.vmem %s414_s11, 128  ;;  %p551_p7 = scmp.lt.s32.totalorder %s414_s11, %s414_s11 }
  0x39   :  { %p547_p6 = scmp.ne.s32.totalorder %s414_s11, %s546_s12  ;;  %p552_p8 = scmp.lt.s32.totalorder %s546_s12, %s546_s12 }
  0x3b   :  { %448 = vmatpush3.xpose.msk.msra.mxu1 %vm80_vm1, %v74_v4  ;;  %441 = vmatpush3.xpose.msk.msra.mxu0 %vm80_vm1, %v72_v5  ;;  %p553_p9 = por %p552_p8, %p551_p7 }
  0x3c   :  { %277 = vmatprep.subr.mxu0 %v77_v7  ;;  %352 = vmatprep.subr.mxu1 %v79_v9 }
  0x3d   :  { %p554_p10 = pnand %p553_p9, %p547_p6 }
  0x3e   :  { %450 = vmatmul.mubr.msk.f32.vlgmr.msra.gmra.mxu1 %vm80_vm1, %v160_v6  ;;  %443 = vmatmul.mubr.msk.f32.vlgmr.msra.gmra.mxu0 %vm80_vm1, %v71_v2 }
  0x3f   :  { %386 = vmatprep.mubr.f32.mxu1 %v582_v0  ;;  %311 = vmatprep.mubr.f32.mxu0 %v582_v0 }
  0x40   :  { %278 = vmatpush1.msra.mxu0 %v76_v8  ;;  %353 = vmatpush1.msra.mxu1 %v78_v10 }
  0xfe   :  { %v236_v11 = vpop.f32.mrf.mxu1  ;;  %v156_v13 = vpop.f32.mrf.mxu0 }
  0xff   :  { %v240_v12 = vmax.f32 %v236_v11, 1e-24 }
 0x100   :  { %v451_v14 = vpop.f32.mrf.mxu1  ;;  %v444_v15 = vpop.f32.mrf.mxu0 }
 0x101   :  { %464 = vrsqrt.f32 %v240_v12 }
 0x10e   :  { %v465_v16 = vpop.eup %464 }
 0x10f   :  { %v242_v17 = vmul.f32 %v465_v16, %v156_v13 }
 0x111   :  { %430 = vmatmul.mubr.msk.f32.vlgmr.msra.gmra.mxu0 %vm243_vm2, %v242_v17  ;;  %318 = vrot.lane.b32.xlu0 %v242_v17, %s584_s2 }
 0x183   :  { %v319_v18 = vpop.permute.xlu0 %318 }
 0x184   :  { %431 = vmatmul.mubr.msk.f32.vlgmr.msra.gmra.mxu1 %vm243_vm2, %v319_v18 }
 0x1d1   :  { %v313_v19 = vpop.f32.mrf.mxu0 }
 0x1d3   :  { %v315_v24 = vpop.f32.mrf.mxu0 }
 0x244   :  { %v388_v20 = vpop.f32.mrf.mxu1 }
 0x245   :  { %v395_v21 = vrot.slane %v388_v20, 6 }
 0x246   :  { %v390_v22 = vpop.f32.mrf.mxu1 }
 0x247   :  { %v396_v23 = vrot.slane %v390_v22, 6  ;;  %v400_v26 = vsel %vm399_vm3, %v313_v19, %v395_v21 }
 0x249   :  { %v401_v25 = vsel %vm399_vm3, %v315_v24, %v396_v23 }
 0x24a   :  { %v404_v27 = vcombine.low %v400_v26, %v401_v25 }
 0x24c   :  { %406 = vst [vmem:[#allocation10] sm:$0xff] %v404_v27 }
 0x24d   :  { %557 = shalt.err (!%p554_p10)
}
 0x24e   :  { %416 = dma.vmem_to_hbm [thread:$0]  %s414_s11, 128, %s630_s4, [#allocation4]  }
 0x24f   :  { %572 = dma.done.wait [#allocation4], 128  }
 0x250   :  { %573 = vsyncadd [#allocation4], 4294967168 }
 0x251   :  { %420 = vsyncpa [#allocation3], 1 }
 0x252   :  { %421 = vsyncpa [#allocation6], 1 }
 0x253   :  { %422 = vsyncpa [#allocation9], 1 }
 0x254   :  { %423 = vsyncpa [#allocation4], 1 }

</bundles_post_ra>
